<compile_context>
chip_gen: v7x
topology: tpu7x:2x2x1
jax: 0.10.0
libtpu: 0.0.40
codegen_flags: <defaults>
</compile_context>

<pallas_src>
import jax
import jax.numpy as jnp
from jax.experimental import pallas as pl
from jax.experimental.pallas import tpu as pltpu

BN_EPS = 1e-3


def bn_add_conv_kernel(x_ref, y_ref, gamma_ref, beta_ref, w_ref, o_ref):
    # x_ref, y_ref: (C, M); gamma/beta: (C, 1); w_ref: (Cout, C); o_ref: (Cout, M)
    x = x_ref[...]

    # BatchNorm2d training mode: per-channel mean / biased variance over all pixels.
    # Two-pass form (numerically safer than E[x^2] - mean^2).
    mean = jnp.mean(x, axis=1, keepdims=True)            # (C, 1)
    cen = x - mean
    var = jnp.mean(cen * cen, axis=1, keepdims=True)     # (C, 1), biased

    # Fold the BN affine into one per-channel scale/bias -> fewer full-tensor VPU passes.
    scale = gamma_ref[...] * jax.lax.rsqrt(var + BN_EPS)  # (C, 1)
    bias = beta_ref[...] - mean * scale                   # (C, 1)

    # bn(x) + y  ==  x * scale + (y + bias)
    z = x * scale + (y_ref[...] + bias)                   # (C, M)

    # 1x1 conv == (Cout, C) @ (C, M) matmul on the MXU.
    o_ref[...] = jnp.dot(w_ref[...], z,
                         preferred_element_type=jnp.float32).astype(o_ref.dtype)


def bn_add_conv(x_nchw, y_nchw, gamma, beta, w_oihw):
    N, C, H, W = x_nchw.shape
    Cout = w_oihw.shape[0]
    M = N * H * W

    if N == 1:
        # Channel-major: NCHW with N==1 -> (C, H*W) is a free reshape (no transpose).
        x2 = x_nchw.reshape(C, M)
        y2 = y_nchw.reshape(C, M)
    else:
        # General-batch fallback: must interleave batches correctly (needs one transpose).
        x2 = jnp.moveaxis(x_nchw, 1, 0).reshape(C, M)
        y2 = jnp.moveaxis(y_nchw, 1, 0).reshape(C, M)

    w2 = w_oihw.reshape(Cout, C)          # (Cout, Cin): free reshape, no transpose
    g2 = gamma.reshape(C, 1)
    b2 = beta.reshape(C, 1)

    # Everything fits comfortably in VMEM on v5e/v6e/v7x -> single invocation, no grid.
    vmem_spec = pl.BlockSpec(memory_space=pltpu.MemorySpace.VMEM)
    out2 = pl.pallas_call(
        bn_add_conv_kernel,
        out_shape=jax.ShapeDtypeStruct((Cout, M), x_nchw.dtype),
        in_specs=[vmem_spec] * 5,
        out_specs=vmem_spec,
    )(x2, y2, g2, b2, w2)

    if N == 1:
        return out2.reshape(1, Cout, H, W)                # free reshape back to NCHW
    return jnp.moveaxis(out2.reshape(Cout, N, H, W), 0, 1)


def _reference(x, y, gamma, beta, w):
    mean = jnp.mean(x, axis=(0, 2, 3), keepdims=True)
    var = jnp.mean((x - mean) ** 2, axis=(0, 2, 3), keepdims=True)
    bn = (x - mean) * jax.lax.rsqrt(var + BN_EPS) * gamma.reshape(1, -1, 1, 1) \
         + beta.reshape(1, -1, 1, 1)
    z = bn + y
    return jax.lax.conv_general_dilated(
        z, w, window_strides=(1, 1), padding="VALID",
        dimension_numbers=("NCHW", "OIHW", "NCHW"),
        precision=jax.lax.Precision.HIGHEST)


if __name__ == "__main__":
    key = jax.random.PRNGKey(0)
    k1, k2, k3, k4, k5 = jax.random.split(key, 5)

    # Shapes implied by the module: 80 in-channels, 480 out-channels, 14x14 spatial.
    N, C, H, W, Cout = 1, 80, 14, 14, 480

    x103 = jax.random.normal(k1, (N, C, H, W), dtype=jnp.float32)
    x96 = jax.random.normal(k2, (N, C, H, W), dtype=jnp.float32)

    gamma = 1.0 + 0.1 * jax.random.normal(k3, (C,), dtype=jnp.float32)
    beta = 0.1 * jax.random.normal(k4, (C,), dtype=jnp.float32)
    w_conv = 0.05 * jax.random.normal(k5, (Cout, C, 1, 1), dtype=jnp.float32)

    out = jax.jit(bn_add_conv)(x103, x96, gamma, beta, w_conv)
    jax.block_until_ready(out)
    assert out.shape == (N, Cout, H, W)

    ref = _reference(x103, x96, gamma, beta, w_conv)
    max_err = float(jnp.max(jnp.abs(out - ref)))
    assert jnp.allclose(out, ref, rtol=2e-2, atol=2e-2), max_err

    print("KERNEL_OK")
</pallas_src>

<mosaic_0001>
module attributes {stable_mosaic.version = 11 : i64} {
  func.func @bn_add_conv_kernel(%arg0: memref<80x196xf32, #tpu.memory_space<vmem>>, %arg1: memref<80x196xf32, #tpu.memory_space<vmem>>, %arg2: memref<80x1xf32, #tpu.memory_space<vmem>>, %arg3: memref<80x1xf32, #tpu.memory_space<vmem>>, %arg4: memref<480x80xf32, #tpu.memory_space<vmem>>, %arg5: memref<480x196xf32, #tpu.memory_space<vmem>>) attributes {dimension_semantics = [], scalar_prefetch = 0 : i64, scratch_operands = 0 : i64, tpu.core_type = #tpu.core_type<tc>} {
    %c0 = arith.constant 0 : index
    %c0_0 = arith.constant 0 : index
    %0 = vector.load %arg0[%c0, %c0_0] : memref<80x196xf32, #tpu.memory_space<vmem>>, vector<80x196xf32>
    %cst = arith.constant dense<0.000000e+00> : vector<80xf32>
    %1 = vector.multi_reduction <add>, %0, %cst [1] : vector<80x196xf32> to vector<80xf32>
    %2 = vector.shape_cast %1 : vector<80xf32> to vector<80x1xf32>
    %cst_1 = arith.constant 1.960000e+02 : f32
    %3 = vector.broadcast %cst_1 : f32 to vector<80x1xf32>
    %4 = arith.divf %2, %3 : vector<80x1xf32>
    %5 = vector.broadcast %4 : vector<80x1xf32> to vector<80x196xf32>
    %6 = arith.subf %0, %5 : vector<80x196xf32>
    %7 = arith.mulf %6, %6 : vector<80x196xf32>
    %cst_2 = arith.constant dense<0.000000e+00> : vector<80xf32>
    %8 = vector.multi_reduction <add>, %7, %cst_2 [1] : vector<80x196xf32> to vector<80xf32>
    %9 = vector.shape_cast %8 : vector<80xf32> to vector<80x1xf32>
    %cst_3 = arith.constant 1.960000e+02 : f32
    %10 = vector.broadcast %cst_3 : f32 to vector<80x1xf32>
    %11 = arith.divf %9, %10 : vector<80x1xf32>
    %c0_4 = arith.constant 0 : index
    %c0_5 = arith.constant 0 : index
    %12 = vector.load %arg2[%c0_4, %c0_5] : memref<80x1xf32, #tpu.memory_space<vmem>>, vector<80x1xf32>
    %cst_6 = arith.constant 1.000000e-03 : f32
    %13 = vector.broadcast %cst_6 : f32 to vector<80x1xf32>
    %14 = arith.addf %11, %13 : vector<80x1xf32>
    %15 = math.rsqrt %14 : vector<80x1xf32>
    %16 = arith.mulf %12, %15 : vector<80x1xf32>
    %c0_7 = arith.constant 0 : index
    %c0_8 = arith.constant 0 : index
    %17 = vector.load %arg3[%c0_7, %c0_8] : memref<80x1xf32, #tpu.memory_space<vmem>>, vector<80x1xf32>
    %18 = arith.mulf %4, %16 : vector<80x1xf32>
    %19 = arith.subf %17, %18 : vector<80x1xf32>
    %20 = vector.broadcast %16 : vector<80x1xf32> to vector<80x196xf32>
    %21 = arith.mulf %0, %20 : vector<80x196xf32>
    %c0_9 = arith.constant 0 : index
    %c0_10 = arith.constant 0 : index
    %22 = vector.load %arg1[%c0_9, %c0_10] : memref<80x196xf32, #tpu.memory_space<vmem>>, vector<80x196xf32>
    %23 = vector.broadcast %19 : vector<80x1xf32> to vector<80x196xf32>
    %24 = arith.addf %22, %23 : vector<80x196xf32>
    %25 = arith.addf %21, %24 : vector<80x196xf32>
    %c0_11 = arith.constant 0 : index
    %c0_12 = arith.constant 0 : index
    %26 = vector.load %arg4[%c0_11, %c0_12] : memref<480x80xf32, #tpu.memory_space<vmem>>, vector<480x80xf32>
    %cst_13 = arith.constant dense<0.000000e+00> : vector<480x196xf32>
    %27 = tpu.matmul %26, %25, %cst_13 {dimension_numbers = #tpu.dot_dimension_numbers<[1], [0], [0], [1], [0, 0, 1, 1], [], []>} : vector<480x80xf32>, vector<80x196xf32>, vector<480x196xf32> -> vector<480x196xf32>
    %c0_14 = arith.constant 0 : index
    %c0_15 = arith.constant 0 : index
    %28 = vector.load %arg5[%c0_14, %c0_15] : memref<480x196xf32, #tpu.memory_space<vmem>>, vector<480x196xf32>
    tpu.vector_store %arg5[%c0_14, %c0_15], %27 {strides = array<i32>} : memref<480x196xf32, #tpu.memory_space<vmem>>, vector<480x196xf32>,
    return
  }
}

</mosaic_0001>

<bundles_post_ra>
// kernel: bn_add_conv.1
= control target key start
LH: loop header
LB: loop body
LE: loop exit
PB: predicated region body
PF: predicated region fallthrough
CT: control target
= control target key end

     0   :  { %vm40_vm0 = vcmask 556032   ;;  %vm492_vm1 = vcmask 654336   ;;  %s2454_s0 = inlined_call_operand.vmem [shape: f32[80,196], index: 0, kind: input, shape index: {}]   ;;  %s2455_s2 = inlined_call_operand.vmem [shape: f32[80,1], index: 2, kind: input, shape index: {}]   ;;  %s2456_s3 = inlined_call_operand.vmem [shape: f32[80,1], index: 3, kind: input, shape index: {}]   ;;  %s2457_s1 = inlined_call_operand.vmem [shape: f32[80,196], index: 1, kind: input, shape index: {}]   ;;  %s2458_s4 = inlined_call_operand.vmem [shape: f32[480,80], index: 4, kind: input, shape index: {}]   ;;  %s2459_s5 = inlined_call_operand.vmem [shape: f32[480,196], index: 5, kind: output, shape index: {}]  }
   0x1   :  { %v1371_v0 = vld [vmem:[%s2454_s0] sm:$0xff]  ;;  %v1376_v1 = vld [vmem:[%s2454_s0 + $0x8] sm:$0xff]  ;;  %v1393_v5 = vld [vmem:[%s2454_s0 + $0x10] sm:$0xff] }
   0x2   :  { %v1381_v2 = vld [vmem:[%s2454_s0 + $0x20] sm:$0xff]  ;;  %v41_v3 = vsel %vm40_vm0, %v1376_v1, 0.0  ;;  %v1388_v4 = vld [vmem:[%s2454_s0 + $0x28] sm:$0xff]  ;;  %v1398_v6 = vld [vmem:[%s2454_s0 + $0x18] sm:$0xff] }
   0x3   :  { %v42_v7 = vadd.f32 %v41_v3, %v1371_v0  ;;  %v49_v8 = vsel %vm40_vm0, %v1388_v4, 0.0  ;;  %v45_v9 = vsel %vm40_vm0, %v1398_v6, 0.0  ;;  %v1408_v10 = vld [vmem:[%s2454_s0 + $0x30] sm:$0xff]  ;;  %v1413_v11 = vld [vmem:[%s2454_s0 + $0x38] sm:$0xff]  ;;  %v1421_v14 = vld [vmem:[%s2454_s0 + $0x48] sm:$0xff] }
   0x4   :  { %v50_v12 = vadd.f32 %v49_v8, %v1381_v2  ;;  %v53_v13 = vsel %vm40_vm0, %v1413_v11, 0.0  ;;  %v1426_v15 = vld [vmem:[%s2454_s0 + $0x58] sm:$0xff]  ;;  %v46_v16 = vadd.f32 %v45_v9, %v1393_v5  ;;  %v1433_v18 = vld [vmem:[%s2454_s0 + $0x40] sm:$0xff]  ;;  %v57_v19 = vsel %vm40_vm0, %v1421_v14, 0.0  ;;  %v1440_v20 = vld [vmem:[%s2454_s0 + $0x50] sm:$0xff] }
   0x5   :  { %43 = vadd.xlane.f32.xlu0 %v42_v7  ;;  %v54_v17 = vadd.f32 %v53_v13, %v1408_v10  ;;  %v61_v21 = vsel %vm40_vm0, %v1426_v15, 0.0  ;;  %v1447_v22 = vld [vmem:[%s2454_s0 + $0x68] sm:$0xff]  ;;  %v1452_v23 = vld [vmem:[%s2454_s0 + $0x78] sm:$0xff]  ;;  %v58_v24 = vadd.f32 %v57_v19, %v1433_v18  ;;  %v1459_v26 = vld [vmem:[%s2454_s0 + $0x60] sm:$0xff] }
   0x6   :  { %51 = vadd.xlane.f32.xlu1 %v50_v12  ;;  %v62_v25 = vadd.f32 %v61_v21, %v1440_v20  ;;  %v65_v27 = vsel %vm40_vm0, %v1447_v22, 0.0  ;;  %v1466_v28 = vld [vmem:[%s2454_s0 + $0x70] sm:$0xff]  ;;  %v69_v29 = vsel %vm40_vm0, %v1452_v23, 0.0  ;;  %v1473_v30 = vld [vmem:[%s2454_s0 + $0x88] sm:$0xff]  ;;  %v1478_v31 = vld [vmem:[%s2454_s0 + $0x98] sm:$0xff] }
   0x7   :  { %v66_v32 = vadd.f32 %v65_v27, %v1459_v26  ;;  %v70_v33 = vadd.f32 %v69_v29, %v1466_v28  ;;  %v1485_v34 = vld [vmem:[%s2454_s0 + $0x80] sm:$0xff]  ;;  %v73_v35 = vsel %vm40_vm0, %v1473_v30, 0.0  ;;  %v1492_v36 = vld [vmem:[%s2454_s0 + $0x90] sm:$0xff]  ;;  %v77_v37 = vsel %vm40_vm0, %v1478_v31, 0.0 }
   0x8   :  { %v74_v38 = vadd.f32 %v73_v35, %v1485_v34  ;;  %v78_v39 = vadd.f32 %v77_v37, %v1492_v36 }
   0x9   :  { %47 = vadd.xlane.f32.xlu0 %v46_v16 }
   0xa   :  { %55 = vadd.xlane.f32.xlu1 %v54_v17 }
   0xd   :  { %59 = vadd.xlane.f32.xlu0 %v58_v24 }
   0xe   :  { %63 = vadd.xlane.f32.xlu1 %v62_v25 }
  0x11   :  { %67 = vadd.xlane.f32.xlu0 %v66_v32 }
  0x12   :  { %71 = vadd.xlane.f32.xlu1 %v70_v33 }
  0x15   :  { %75 = vadd.xlane.f32.xlu0 %v74_v38 }
  0x16   :  { %79 = vadd.xlane.f32.xlu1 %v78_v39 }
  0x92   :  { %v44_v40 = vpop.xlane.xlu0 %43 }
  0x93   :  { %v1498_v41 = vmul.f32 0.0051020407, %v44_v40  ;;  %v52_v42 = vpop.xlane.xlu1 %51 }
  0x94   :  { %v1500_v43 = vmul.f32 0.0051020407, %v52_v42 }
  0x95   :  { %v92_v44 = vsub.f32 %v1371_v0, %v1498_v41  ;;  %v93_v45 = vsub.f32 %v1376_v1, %v1498_v41 }
  0x96   :  { %v48_v46 = vpop.xlane.xlu0 %47  ;;  %v96_v47 = vsub.f32 %v1381_v2, %v1500_v43  ;;  %v97_v48 = vsub.f32 %v1388_v4, %v1500_v43 }
  0x97   :  { %v1510_v49 = vmul.f32 0.0051020407, %v48_v46  ;;  %v56_v50 = vpop.xlane.xlu1 %55  ;;  %v112_v51 = vmul.f32 %v92_v44, %v92_v44  ;;  %v113_v52 = vmul.f32 %v93_v45, %v93_v45 }
  0x98   :  { %v1512_v53 = vmul.f32 0.0051020407, %v56_v50  ;;  %v116_v54 = vmul.f32 %v96_v47, %v96_v47  ;;  %v117_v55 = vmul.f32 %v97_v48, %v97_v48 }
  0x99   :  { %v132_v56 = vsel %vm40_vm0, %v113_v52, 0.0  ;;  %v94_v57 = vsub.f32 %v1393_v5, %v1510_v49  ;;  %v95_v58 = vsub.f32 %v1398_v6, %v1510_v49 }
  0x9a   :  { %v60_v59 = vpop.xlane.xlu0 %59  ;;  %v133_v60 = vadd.f32 %v132_v56, %v112_v51  ;;  %v140_v61 = vsel %vm40_vm0, %v117_v55, 0.0  ;;  %v98_v62 = vsub.f32 %v1408_v10, %v1512_v53  ;;  %v99_v63 = vsub.f32 %v1413_v11, %v1512_v53 }
  0x9b   :  { %v1524_v3 = vmul.f32 0.0051020407, %v60_v59  ;;  %v64_v7 = vpop.xlane.xlu1 %63  ;;  %v114_v8 = vmul.f32 %v94_v57, %v94_v57  ;;  %v115_v9 = vmul.f32 %v95_v58, %v95_v58  ;;  %v141_v13 = vadd.f32 %v140_v61, %v116_v54 }
  0x9c   :  { %134 = vadd.xlane.f32.xlu0 %v133_v60  ;;  %v1526_v12 = vmul.f32 0.0051020407, %v64_v7  ;;  %v118_v16 = vmul.f32 %v98_v62, %v98_v62  ;;  %v119_v17 = vmul.f32 %v99_v63, %v99_v63 }
  0x9d   :  { %v136_v19 = vsel %vm40_vm0, %v115_v9, 0.0  ;;  %v100_v21 = vsub.f32 %v1433_v18, %v1524_v3  ;;  %v101_v24 = vsub.f32 %v1421_v14, %v1524_v3 }
  0x9e   :  { %v68_v25 = vpop.xlane.xlu0 %67  ;;  %v137_v27 = vadd.f32 %v136_v19, %v114_v8  ;;  %v144_v29 = vsel %vm40_vm0, %v119_v17, 0.0  ;;  %v102_v32 = vsub.f32 %v1440_v20, %v1526_v12  ;;  %v103_v33 = vsub.f32 %v1426_v15, %v1526_v12 }
  0x9f   :  { %v1538_v35 = vmul.f32 0.0051020407, %v68_v25  ;;  %v72_v37 = vpop.xlane.xlu1 %71  ;;  %v120_v38 = vmul.f32 %v100_v21, %v100_v21  ;;  %v121_v39 = vmul.f32 %v101_v24, %v101_v24  ;;  %v145_v42 = vadd.f32 %v144_v29, %v118_v16 }
  0xa0   :  { %142 = vadd.xlane.f32.xlu0 %v141_v13  ;;  %138 = vadd.xlane.f32.xlu1 %v137_v27  ;;  %v1540_v40 = vmul.f32 0.0051020407, %v72_v37  ;;  %v122_v44 = vmul.f32 %v102_v32, %v102_v32  ;;  %v123_v45 = vmul.f32 %v103_v33, %v103_v33 }
  0xa1   :  { %v148_v46 = vsel %vm40_vm0, %v121_v39, 0.0  ;;  %v104_v47 = vsub.f32 %v1459_v26, %v1538_v35  ;;  %v105_v48 = vsub.f32 %v1447_v22, %v1538_v35  ;;  %v1336_v39 = vmov 0  }
  0xa2   :  { %v76_v50 = vpop.xlane.xlu0 %75  ;;  %v149_v51 = vadd.f32 %v148_v46, %v120_v38  ;;  %v152_v52 = vsel %vm40_vm0, %v123_v45, 0.0  ;;  %v106_v54 = vsub.f32 %v1466_v28, %v1540_v40  ;;  %v107_v55 = vsub.f32 %v1452_v23, %v1540_v40  ;;  %1314 = vset.pattern.permute.xlu0 %v1336_v39  ;;  %1315 = vset.pattern.permute.xlu1 %v1336_v39 }
  0xa3   :  { %v1552_v56 = vmul.f32 0.0051020407, %v76_v50  ;;  %v80_v57 = vpop.xlane.xlu1 %79  ;;  %v124_v58 = vmul.f32 %v104_v47, %v104_v47  ;;  %v125_v59 = vmul.f32 %v105_v48, %v105_v48  ;;  %v153_v61 = vadd.f32 %v152_v52, %v122_v44 }
  0xa4   :  { %146 = vadd.xlane.f32.xlu1 %v145_v42  ;;  %150 = vadd.xlane.f32.xlu0 %v149_v51  ;;  %v1554_v60 = vmul.f32 0.0051020407, %v80_v57  ;;  %v126_v62 = vmul.f32 %v106_v54, %v106_v54  ;;  %v127_v63 = vmul.f32 %v107_v55, %v107_v55 }
  0xa5   :  { %v156_v7 = vsel %vm40_vm0, %v125_v59, 0.0  ;;  %v108_v8 = vsub.f32 %v1485_v34, %v1552_v56  ;;  %v109_v9 = vsub.f32 %v1473_v30, %v1552_v56 }
  0xa6   :  { %v157_v13 = vadd.f32 %v156_v7, %v124_v58  ;;  %v160_v16 = vsel %vm40_vm0, %v127_v63, 0.0  ;;  %v110_v17 = vsub.f32 %v1492_v36, %v1554_v60  ;;  %v111_v19 = vsub.f32 %v1478_v31, %v1554_v60  ;;  %v182_v7 = vld [vmem:[%s2455_s2] sm:$0xff] }
  0xa7   :  { %v128_v21 = vmul.f32 %v108_v8, %v108_v8  ;;  %v129_v24 = vmul.f32 %v109_v9, %v109_v9  ;;  %v161_v25 = vadd.f32 %v160_v16, %v126_v62 }
  0xa8   :  { %154 = vadd.xlane.f32.xlu1 %v153_v61  ;;  %158 = vadd.xlane.f32.xlu0 %v157_v13  ;;  %v130_v27 = vmul.f32 %v110_v17, %v110_v17  ;;  %v131_v29 = vmul.f32 %v111_v19, %v111_v19 }
  0xa9   :  { %v164_v32 = vsel %vm40_vm0, %v129_v24, 0.0 }
  0xaa   :  { %v165_v33 = vadd.f32 %v164_v32, %v128_v21  ;;  %v168_v37 = vsel %vm40_vm0, %v131_v29, 0.0 }
  0xab   :  { %v169_v38 = vadd.f32 %v168_v37, %v130_v27 }
  0xac   :  { %162 = vadd.xlane.f32.xlu1 %v161_v25  ;;  %166 = vadd.xlane.f32.xlu0 %v165_v33  ;;  %v183_v25 = vld [vmem:[%s2455_s2 + $0x8] sm:$0xff] }
  0xb0   :  { %170 = vadd.xlane.f32.xlu1 %v169_v38 }
 0x129   :  { %v135_v42 = vpop.xlane.xlu0 %134 }
 0x12a   :  { %v172_v44 = vmul.f32 0.0051020407, %v135_v42 }
 0x12c   :  { %v192_v45 = vadd.f32 0.001, %v172_v44  ;;  %v184_v44 = vld [vmem:[%s2455_s2 + $0x10] sm:$0xff] }
 0x12d   :  { %v139_v46 = vpop.xlane.xlu1 %138  ;;  %v143_v47 = vpop.xlane.xlu0 %142 }
 0x12e   :  { %1316 = vrsqrt.f32 %v192_v45  ;;  %v173_v48 = vmul.f32 0.0051020407, %v139_v46  ;;  %v174_v50 = vmul.f32 0.0051020407, %v143_v47 }
 0x130   :  { %v193_v51 = vadd.f32 0.001, %v173_v48  ;;  %v194_v52 = vadd.f32 0.001, %v174_v50  ;;  %v187_v50 = vld [vmem:[%s2455_s2 + $0x28] sm:$0xff] }
 0x131   :  { %v147_v54 = vpop.xlane.xlu1 %146  ;;  %v151_v55 = vpop.xlane.xlu0 %150 }
 0x132   :  { %1318 = vrsqrt.f32 %v193_v51  ;;  %v175_v57 = vmul.f32 0.0051020407, %v147_v54  ;;  %v176_v59 = vmul.f32 0.0051020407, %v151_v55  ;;  %v185_v51 = vld [vmem:[%s2455_s2 + $0x18] sm:$0xff] }
 0x133   :  { %1320 = vrsqrt.f32 %v194_v52 }
 0x134   :  { %v195_v58 = vadd.f32 0.001, %v175_v57  ;;  %v196_v9 = vadd.f32 0.001, %v176_v59  ;;  %v186_v59 = vld [vmem:[%s2455_s2 + $0x20] sm:$0xff] }
 0x135   :  { %v155_v61 = vpop.xlane.xlu1 %154  ;;  %v159_v62 = vpop.xlane.xlu0 %158 }
 0x136   :  { %v177_v63 = vmul.f32 0.0051020407, %v155_v61  ;;  %1322 = vrsqrt.f32 %v195_v58  ;;  %v178_v16 = vmul.f32 0.0051020407, %v159_v62  ;;  %v189_v58 = vld [vmem:[%s2455_s2 + $0x38] sm:$0xff] }
 0x138   :  { %v1317_v8 = vpop.eup %1316  ;;  %v197_v13 = vadd.f32 0.001, %v177_v63  ;;  %v198_v29 = vadd.f32 0.001, %v178_v16 }
 0x139   :  { %v163_v17 = vpop.xlane.xlu1 %162  ;;  %v167_v19 = vpop.xlane.xlu0 %166  ;;  %v212_v21 = vmul.f32 %v1317_v8, %v182_v7  ;;  %v191_v8 = vld [vmem:[%s2455_s2 + $0x48] sm:$0xff] }
 0x13a   :  { %1324 = vrsqrt.f32 %v197_v13  ;;  %v179_v24 = vmul.f32 0.0051020407, %v163_v17  ;;  %v180_v33 = vmul.f32 0.0051020407, %v167_v19 }
 0x13b   :  { %254 = vperm.xlu0 %1314, %v212_v21   ;;  %1326 = vrsqrt.f32 %v196_v9  ;;  %v188_v9 = vld [vmem:[%s2455_s2 + $0x30] sm:$0xff] }
 0x13c   :  { %v1319_v27 = vpop.eup %1318  ;;  %v199_v32 = vadd.f32 0.001, %v179_v24  ;;  %v200_v45 = vadd.f32 0.001, %v180_v33 }
 0x13d   :  { %v171_v37 = vpop.xlane.xlu1 %170  ;;  %v213_v38 = vmul.f32 %v1319_v27, %v183_v25  ;;  %v1321_v39 = vpop.eup %1320  ;;  %v227_v25 = vld [vmem:[%s2456_s3 + $0x28] sm:$0xff]  ;;  %v190_v27 = vld [vmem:[%s2455_s2 + $0x40] sm:$0xff] }
 0x13e   :  { %1328 = vrsqrt.f32 %v199_v32  ;;  %v181_v42 = vmul.f32 0.0051020407, %v171_v37  ;;  %v214_v47 = vmul.f32 %v1321_v39, %v184_v44  ;;  %v232_v37 = vmul.f32 %v212_v21, %v1498_v41  ;;  %v222_v39 = vld [vmem:[%s2456_s3] sm:$0xff]  ;;  %v231_v41 = vld [vmem:[%s2456_s3 + $0x48] sm:$0xff] }
 0x13f   :  { %259 = vperm.xlu1 %1315, %v213_v38   ;;  %1330 = vrsqrt.f32 %v198_v29 }
 0x140   :  { %v201_v46 = vadd.f32 0.001, %v181_v42  ;;  %v1323_v48 = vpop.eup %1322  ;;  %v242_v44 = vsub.f32 %v222_v39, %v232_v37 }
 0x141   :  { %v215_v55 = vmul.f32 %v1323_v48, %v185_v51  ;;  %v225_v51 = vld [vmem:[%s2456_s3 + $0x18] sm:$0xff] }
 0x142   :  { %1332 = vrsqrt.f32 %v201_v46  ;;  %v233_v46 = vmul.f32 %v213_v38, %v1510_v49 }
 0x143   :  { %264 = vperm.xlu1 %1315, %v214_v47   ;;  %1334 = vrsqrt.f32 %v200_v45  ;;  %v235_v38 = vmul.f32 %v215_v55, %v1512_v53  ;;  %v228_v53 = vld [vmem:[%s2456_s3 + $0x30] sm:$0xff] }
 0x144   :  { %v1325_v52 = vpop.eup %1324 }
 0x145   :  { %v217_v54 = vmul.f32 %v1325_v52, %v187_v50  ;;  %v1327_v57 = vpop.eup %1326  ;;  %v234_v50 = vmul.f32 %v214_v47, %v1500_v43  ;;  %v245_v52 = vsub.f32 %v225_v51, %v235_v38  ;;  %v226_v43 = vld [vmem:[%s2456_s3 + $0x20] sm:$0xff]  ;;  %v329_v38 = vld [vmem:[%s2457_s1 + $0x38] sm:$0xff]  ;;  %v332_v51 = vld [vmem:[%s2457_s1 + $0x50] sm:$0xff] }
 0x146   :  { %v216_v63 = vmul.f32 %v1327_v57, %v186_v59 }
 0x147   :  { %279 = vperm.xlu0 %1314, %v217_v54   ;;  %269 = vperm.xlu1 %1315, %v215_v55   ;;  %v237_v19 = vmul.f32 %v217_v54, %v1526_v12  ;;  %v229_v12 = vld [vmem:[%s2456_s3 + $0x38] sm:$0xff] }
 0x148   :  { %v1329_v61 = vpop.eup %1328  ;;  %v236_v54 = vmul.f32 %v216_v63, %v1524_v3  ;;  %v230_v3 = vld [vmem:[%s2456_s3 + $0x40] sm:$0xff] }
 0x149   :  { %v219_v62 = vmul.f32 %v1329_v61, %v189_v58  ;;  %v1331_v7 = vpop.eup %1330  ;;  %v247_v29 = vsub.f32 %v227_v25, %v237_v19  ;;  %v1337_v61 = vmov 0.0   ;;  %v323_v19 = vld [vmem:[%s2457_s1 + $0x8] sm:$0xff] }
 0x14a   :  { %v218_v17 = vmul.f32 %v1331_v7, %v188_v9  ;;  %v246_v47 = vsub.f32 %v226_v43, %v236_v54  ;;  %737 = vmatprep.mubr.f32.mxu0 %v1337_v61  ;;  %917 = vmatprep.mubr.f32.mxu1 %v1337_v61 }
 0x14b   :  { %289 = vperm.xlu0 %1314, %v219_v62   ;;  %274 = vperm.xlu1 %1315, %v216_v63   ;;  %v239_v33 = vmul.f32 %v219_v62, %v1540_v40  ;;  %v223_v40 = vld [vmem:[%s2456_s3 + $0x8] sm:$0xff] }
 0x14c   :  { %v1333_v13 = vpop.eup %1332  ;;  %v243_v48 = vsub.f32 %v223_v40, %v233_v46  ;;  %v238_v57 = vmul.f32 %v218_v17, %v1538_v35 }
 0x14d   :  { %v221_v16 = vmul.f32 %v1333_v13, %v191_v8  ;;  %v1335_v24 = vpop.eup %1334  ;;  %v249_v42 = vsub.f32 %v229_v12, %v239_v33 }
 0x14e   :  { %v220_v32 = vmul.f32 %v1335_v24, %v190_v27  ;;  %v248_v55 = vsub.f32 %v228_v53, %v238_v57  ;;  %v324_v27 = vld [vmem:[%s2457_s1 + $0x10] sm:$0xff] }
 0x14f   :  { %299 = vperm.xlu0 %1314, %v221_v16   ;;  %284 = vperm.xlu1 %1315, %v218_v17   ;;  %v241_v45 = vmul.f32 %v221_v16, %v1554_v60  ;;  %v224_v60 = vld [vmem:[%s2456_s3 + $0x10] sm:$0xff]  ;;  %v322_v17 = vld [vmem:[%s2457_s1] sm:$0xff] }
 0x150   :  { %v244_v49 = vsub.f32 %v224_v60, %v234_v50  ;;  %v240_v58 = vmul.f32 %v220_v32, %v1552_v56  ;;  %v326_v60 = vld [vmem:[%s2457_s1 + $0x20] sm:$0xff] }
 0x151   :  { %v251_v21 = vsub.f32 %v231_v41, %v241_v45 }
 0x152   :  { %v250_v59 = vsub.f32 %v230_v3, %v240_v58 }
 0x153   :  { %369 = vperm.xlu0 %1314, %v247_v29   ;;  %294 = vperm.xlu1 %1315, %v220_v32   ;;  %v325_v29 = vld [vmem:[%s2457_s1 + $0x18] sm:$0xff] }
 0x157   :  { %379 = vperm.xlu0 %1314, %v249_v42   ;;  %344 = vperm.xlu1 %1315, %v242_v44  }
 0x15b   :  { %389 = vperm.xlu0 %1314, %v251_v21   ;;  %349 = vperm.xlu1 %1315, %v243_v48  }
 0x15f   :  { %354 = vperm.xlu1 %1315, %v244_v49  }
 0x163   :  { %359 = vperm.xlu1 %1315, %v245_v52   ;;  %v333_v52 = vld [vmem:[%s2457_s1 + $0x58] sm:$0xff] }
 0x167   :  { %364 = vperm.xlu1 %1315, %v246_v47  }
 0x16b   :  { %374 = vperm.xlu1 %1315, %v248_v55  }
 0x16f   :  { %384 = vperm.xlu1 %1315, %v250_v59  }
 0x1ba   :  { %v255_v7 = vpop.permute.xlu0 %254 }
 0x1bb   :  { %v302_v37 = vmul.f32 %v255_v7, %v1371_v0  ;;  %v303_v12 = vmul.f32 %v255_v7, %v1376_v1  ;;  %v327_v0 = vld [vmem:[%s2457_s1 + $0x28] sm:$0xff] }
 0x1be   :  { %v260_v35 = vpop.permute.xlu1 %259 }
 0x1bf   :  { %v304_v42 = vmul.f32 %v260_v35, %v1393_v5  ;;  %v305_v44 = vmul.f32 %v260_v35, %v1398_v6  ;;  %v328_v6 = vld [vmem:[%s2457_s1 + $0x30] sm:$0xff] }
 0x1c2   :  { %v265_v62 = vpop.permute.xlu1 %264 }
 0x1c3   :  { %v306_v47 = vmul.f32 %v265_v62, %v1381_v2  ;;  %v307_v57 = vmul.f32 %v265_v62, %v1388_v4  ;;  %v330_v2 = vld [vmem:[%s2457_s1 + $0x40] sm:$0xff]  ;;  %v331_v4 = vld [vmem:[%s2457_s1 + $0x48] sm:$0xff] }
 0x1c6   :  { %v270_v63 = vpop.permute.xlu1 %269  ;;  %v280_v9 = vpop.permute.xlu0 %279 }
 0x1c7   :  { %v308_v55 = vmul.f32 %v270_v63, %v1408_v10  ;;  %v309_v58 = vmul.f32 %v270_v63, %v1413_v11  ;;  %v312_v7 = vmul.f32 %v280_v9, %v1440_v20  ;;  %v336_v10 = vld [vmem:[%s2457_s1 + $0x70] sm:$0xff]  ;;  %v337_v11 = vld [vmem:[%s2457_s1 + $0x78] sm:$0xff] }
 0x1ca   :  { %v275_v8 = vpop.permute.xlu1 %274  ;;  %v1642_v56 = vpop.permute.xlu0 %289 }
 0x1ce   :  { %v1640_v13 = vpop.permute.xlu1 %284  ;;  %v1652_v25 = vpop.permute.xlu0 %299 }
 0x1d2   :  { %v1644_v16 = vpop.permute.xlu1 %294  ;;  %v370_v41 = vpop.permute.xlu0 %369 }
 0x1d6   :  { %v345_v24 = vpop.permute.xlu1 %344  ;;  %v380_v3 = vpop.permute.xlu0 %379 }
 0x1d7   :  { %v392_v32 = vadd.f32 %v345_v24, %v322_v17  ;;  %v393_v33 = vadd.f32 %v345_v24, %v323_v19  ;;  %v313_v17 = vmul.f32 %v280_v9, %v1426_v15  ;;  %v402_v19 = vadd.f32 %v370_v41, %v332_v51 }
 0x1d8   :  { %v403_v24 = vadd.f32 %v370_v41, %v333_v52  ;;  %v310_v9 = vmul.f32 %v275_v8, %v1433_v18  ;;  %v334_v18 = vld [vmem:[%s2457_s1 + $0x60] sm:$0xff] }
 0x1d9   :  { %v413_v40 = vadd.f32 %v393_v33, %v303_v12  ;;  %v412_v48 = vadd.f32 %v392_v32, %v302_v37 }
 0x1da   :  { %v350_v39 = vpop.permute.xlu1 %349  ;;  %v390_v41 = vpop.permute.xlu0 %389 }
 0x1db   :  { %v394_v45 = vadd.f32 %v350_v39, %v324_v27  ;;  %v395_v46 = vadd.f32 %v350_v39, %v325_v29  ;;  %v311_v27 = vmul.f32 %v275_v8, %v1421_v14  ;;  %v316_v29 = vmul.f32 %v1642_v56, %v1466_v28  ;;  %v335_v14 = vld [vmem:[%s2457_s1 + $0x68] sm:$0xff]  ;;  %v340_v8 = vld [vmem:[%s2457_s1 + $0x90] sm:$0xff] }
 0x1dc   :  { %v423_v28 = vadd.f32 %v403_v24, %v313_v17  ;;  %v434_v24 = vld [vmem:[%s2458_s4 + $0x10] sm:$0xff] }
 0x1dd   :  { %v415_v21 = vadd.f32 %v395_v46, %v305_v44  ;;  %v414_v50 = vadd.f32 %v394_v45, %v304_v42  ;;  %v317_v42 = vmul.f32 %v1642_v56, %v1452_v23  ;;  %v422_v44 = vadd.f32 %v402_v19, %v312_v7  ;;  %v463_v19 = vld [vmem:[%s2458_s4 + $0xf8] sm:$0xff] }
 0x1de   :  { %v355_v1 = vpop.permute.xlu1 %354  ;;  %v406_v45 = vadd.f32 %v380_v3, %v336_v10  ;;  %v407_v46 = vadd.f32 %v380_v3, %v337_v11  ;;  %v314_v23 = vmul.f32 %v1640_v13, %v1459_v26  ;;  %v315_v56 = vmul.f32 %v1640_v13, %v1447_v22  ;;  %v338_v22 = vld [vmem:[%s2457_s1 + $0x80] sm:$0xff]  ;;  %v339_v13 = vld [vmem:[%s2457_s1 + $0x88] sm:$0xff] }
 0x1df   :  { %v1282_v49 = vpack.c.bf16 %v415_v21, %v413_v40  ;;  %v1284_v5 = vpack.c.bf16 %v414_v50, %v412_v48  ;;  %v396_v54 = vadd.f32 %v355_v1, %v326_v60  ;;  %v397_v43 = vadd.f32 %v355_v1, %v327_v0  ;;  %v341_v48 = vld [vmem:[%s2457_s1 + $0x98] sm:$0xff]  ;;  %v465_v10 = vld [vmem:[%s2458_s4 + $0x108] sm:$0xff]  ;;  %v436_v11 = vld [vmem:[%s2458_s4 + $0x20] sm:$0xff] }
 0x1e0   :  { %v410_v26 = vadd.f32 %v390_v41, %v340_v8  ;;  %v411_v51 = vadd.f32 %v390_v41, %v341_v48  ;;  %v446_v8 = vld [vmem:[%s2458_s4 + $0x70] sm:$0xff]  ;;  %v476_v41 = vld [vmem:[%s2458_s4 + $0x160] sm:$0xff]  ;;  %v449_v48 = vld [vmem:[%s2458_s4 + $0x88] sm:$0xff] }
 0x1e1   :  { %1283 = vmatprep.subr.bf16.mxu0 %v1282_v49  ;;  %1302 = vmatprep.subr.bf16.mxu1 %v1282_v49  ;;  %v416_v20 = vadd.f32 %v396_v54, %v306_v47  ;;  %v417_v15 = vadd.f32 %v397_v43, %v307_v57  ;;  %v321_v43 = vmul.f32 %v1652_v25, %v1478_v31 }
 0x1e2   :  { %v360_v53 = vpop.permute.xlu1 %359  ;;  %1285 = vmatpush1.bf16.msra.mxu0 %v1284_v5  ;;  %1307 = vmatpush1.bf16.msra.mxu1 %v1284_v5  ;;  %v320_v5 = vmul.f32 %v1652_v25, %v1492_v36  ;;  %v318_v36 = vmul.f32 %v1644_v16, %v1485_v34  ;;  %v319_v47 = vmul.f32 %v1644_v16, %v1473_v30  ;;  %v432_v30 = vld [vmem:[%s2458_s4] sm:$0xff]  ;;  %v462_v16 = vld [vmem:[%s2458_s4 + $0xf0] sm:$0xff]  ;;  %v433_v25 = vld [vmem:[%s2458_s4 + $0x8] sm:$0xff] }
 0x1e3   :  { %v398_v59 = vadd.f32 %v360_v53, %v328_v6  ;;  %v399_v35 = vadd.f32 %v360_v53, %v329_v38  ;;  %v426_v6 = vadd.f32 %v406_v45, %v316_v29  ;;  %v427_v38 = vadd.f32 %v407_v46, %v317_v42  ;;  %v469_v29 = vld [vmem:[%s2458_s4 + $0x128] sm:$0xff]  ;;  %v472_v42 = vld [vmem:[%s2458_s4 + $0x140] sm:$0xff] }
 0x1e4   :  { %v473_v45 = vld [vmem:[%s2458_s4 + $0x148] sm:$0xff]  ;;  %v444_v46 = vld [vmem:[%s2458_s4 + $0x60] sm:$0xff] }
 0x1e5   :  { %v418_v62 = vadd.f32 %v398_v59, %v308_v55  ;;  %v419_v63 = vadd.f32 %v399_v35, %v309_v58  ;;  %v430_v59 = vadd.f32 %v410_v26, %v320_v5  ;;  %v431_v35 = vadd.f32 %v411_v51, %v321_v43  ;;  %v452_v5 = vld [vmem:[%s2458_s4 + $0xa0] sm:$0xff]  ;;  %v483_v26 = vld [vmem:[%s2458_s4 + $0x198] sm:$0xff]  ;;  %v486_v43 = vld [vmem:[%s2458_s4 + $0x1b0] sm:$0xff] }
 0x1e6   :  { %v365_v32 = vpop.permute.xlu1 %364  ;;  %v455_v51 = vld [vmem:[%s2458_s4 + $0xb8] sm:$0xff] }
 0x1e7   :  { %v400_v33 = vadd.f32 %v365_v32, %v330_v2  ;;  %v401_v37 = vadd.f32 %v365_v32, %v331_v4  ;;  %v1286_v12 = vpack.c.bf16 %v419_v63, %v417_v15  ;;  %v1288_v39 = vpack.c.bf16 %v418_v62, %v416_v20  ;;  %v464_v2 = vld [vmem:[%s2458_s4 + $0x100] sm:$0xff]  ;;  %v435_v4 = vld [vmem:[%s2458_s4 + $0x18] sm:$0xff]  ;;  %v466_v20 = vld [vmem:[%s2458_s4 + $0x110] sm:$0xff] }
 0x1e8   :  { %v437_v15 = vld [vmem:[%s2458_s4 + $0x28] sm:$0xff]  ;;  %v467_v62 = vld [vmem:[%s2458_s4 + $0x118] sm:$0xff]  ;;  %v438_v63 = vld [vmem:[%s2458_s4 + $0x30] sm:$0xff] }
 0x1e9   :  { %v420_v40 = vadd.f32 %v400_v33, %v310_v9  ;;  %v421_v21 = vadd.f32 %v401_v37, %v311_v27  ;;  %1287 = vmatprep.subr.bf16.mxu0 %v1286_v12  ;;  %1303 = vmatprep.subr.bf16.mxu1 %v1286_v12  ;;  %v468_v9 = vld [vmem:[%s2458_s4 + $0x120] sm:$0xff]  ;;  %v439_v27 = vld [vmem:[%s2458_s4 + $0x38] sm:$0xff]  ;;  %v470_v33 = vld [vmem:[%s2458_s4 + $0x130] sm:$0xff] }
 0x1ea   :  { %v375_v50 = vpop.permute.xlu1 %374  ;;  %1289 = vmatpush1.bf16.msra.mxu0 %v1288_v39  ;;  %1308 = vmatpush1.bf16.msra.mxu1 %v1288_v39  ;;  %v440_v32 = vld [vmem:[%s2458_s4 + $0x40] sm:$0xff]  ;;  %v441_v37 = vld [vmem:[%s2458_s4 + $0x48] sm:$0xff]  ;;  %v471_v12 = vld [vmem:[%s2458_s4 + $0x138] sm:$0xff] }
 0x1eb   :  { %v404_v60 = vadd.f32 %v375_v50, %v334_v18  ;;  %v405_v0 = vadd.f32 %v375_v50, %v335_v14  ;;  %v1290_v1 = vpack.c.bf16 %v423_v28, %v421_v21  ;;  %v1292_v49 = vpack.c.bf16 %v422_v44, %v420_v40  ;;  %v442_v39 = vld [vmem:[%s2458_s4 + $0x50] sm:$0xff]  ;;  %v443_v44 = vld [vmem:[%s2458_s4 + $0x58] sm:$0xff]  ;;  %v445_v14 = vld [vmem:[%s2458_s4 + $0x68] sm:$0xff] }
 0x1ec   :  { %v474_v18 = vld [vmem:[%s2458_s4 + $0x150] sm:$0xff]  ;;  %v475_v28 = vld [vmem:[%s2458_s4 + $0x158] sm:$0xff]  ;;  %v477_v21 = vld [vmem:[%s2458_s4 + $0x168] sm:$0xff] }
 0x1ed   :  { %v424_v52 = vadd.f32 %v404_v60, %v314_v23  ;;  %v425_v54 = vadd.f32 %v405_v0, %v315_v56  ;;  %1291 = vmatprep.subr.bf16.mxu0 %v1290_v1  ;;  %1304 = vmatprep.subr.bf16.mxu1 %v1290_v1  ;;  %v447_v40 = vld [vmem:[%s2458_s4 + $0x78] sm:$0xff]  ;;  %v448_v23 = vld [vmem:[%s2458_s4 + $0x80] sm:$0xff]  ;;  %v478_v56 = vld [vmem:[%s2458_s4 + $0x170] sm:$0xff] }
 0x1ee   :  { %v385_v57 = vpop.permute.xlu1 %384  ;;  %1293 = vmatpush1.bf16.msra.mxu0 %v1292_v49  ;;  %1309 = vmatpush1.bf16.msra.mxu1 %v1292_v49  ;;  %v479_v50 = vld [vmem:[%s2458_s4 + $0x178] sm:$0xff]  ;;  %v450_v60 = vld [vmem:[%s2458_s4 + $0x90] sm:$0xff]  ;;  %v480_v0 = vld [vmem:[%s2458_s4 + $0x180] sm:$0xff] }
 0x1ef   :  { %v408_v53 = vadd.f32 %v385_v57, %v338_v22  ;;  %v409_v55 = vadd.f32 %v385_v57, %v339_v13  ;;  %v1294_v58 = vpack.c.bf16 %v427_v38, %v425_v54  ;;  %v1296_v3 = vpack.c.bf16 %v426_v6, %v424_v52  ;;  %v451_v1 = vld [vmem:[%s2458_s4 + $0x98] sm:$0xff]  ;;  %v481_v49 = vld [vmem:[%s2458_s4 + $0x188] sm:$0xff]  ;;  %v482_v6 = vld [vmem:[%s2458_s4 + $0x190] sm:$0xff] }
 0x1f0   :  { %v453_v38 = vld [vmem:[%s2458_s4 + $0xa8] sm:$0xff]  ;;  %v454_v22 = vld [vmem:[%s2458_s4 + $0xb0] sm:$0xff]  ;;  %v484_v13 = vld [vmem:[%s2458_s4 + $0x1a0] sm:$0xff] }
 0x1f1   :  { %v428_v7 = vadd.f32 %v408_v53, %v318_v36  ;;  %v429_v17 = vadd.f32 %v409_v55, %v319_v47  ;;  %1295 = vmatprep.subr.bf16.mxu0 %v1294_v58  ;;  %1305 = vmatprep.subr.bf16.mxu1 %v1294_v58  ;;  %v485_v52 = vld [vmem:[%s2458_s4 + $0x1a8] sm:$0xff]  ;;  %v456_v54 = vld [vmem:[%s2458_s4 + $0xc0] sm:$0xff]  ;;  %v487_v47 = vld [vmem:[%s2458_s4 + $0x1b8] sm:$0xff] }
 0x1f2   :  { %1297 = vmatpush1.bf16.msra.mxu0 %v1296_v3  ;;  %1310 = vmatpush1.bf16.msra.mxu1 %v1296_v3  ;;  %v457_v36 = vld [vmem:[%s2458_s4 + $0xc8] sm:$0xff]  ;;  %v458_v57 = vld [vmem:[%s2458_s4 + $0xd0] sm:$0xff]  ;;  %v488_v53 = vld [vmem:[%s2458_s4 + $0x1c0] sm:$0xff] }
 0x1f3   :  { %v1298_v31 = vpack.c.bf16 %v431_v35, %v429_v17  ;;  %v1300_v34 = vpack.c.bf16 %v430_v59, %v428_v7  ;;  %v459_v55 = vld [vmem:[%s2458_s4 + $0xd8] sm:$0xff]  ;;  %v489_v58 = vld [vmem:[%s2458_s4 + $0x1c8] sm:$0xff]  ;;  %v460_v3 = vld [vmem:[%s2458_s4 + $0xe0] sm:$0xff] }
 0x1f4   :  { %v490_v59 = vld [vmem:[%s2458_s4 + $0x1d0] sm:$0xff]  ;;  %v461_v35 = vld [vmem:[%s2458_s4 + $0xe8] sm:$0xff]  ;;  %v491_v7 = vld [vmem:[%s2458_s4 + $0x1d8] sm:$0xff] }
 0x1f5   :  { %1299 = vmatprep.subr.bf16.mxu0 %v1298_v31  ;;  %1306 = vmatprep.subr.bf16.mxu1 %v1298_v31 }
 0x1f6   :  { %1301 = vmatpush1.bf16.msra.mxu0 %v1300_v34  ;;  %1311 = vmatpush1.bf16.msra.mxu1 %v1300_v34 }
 0x1f9   :  { %1222 = vmatmul.mubr.msk.f32.vlgmr.msra.gmra.mrb[0].mxu0 %vm492_vm1, %v432_v30  ;;  %1252 = vmatmul.mubr.msk.f32.vlgmr.msra.gmra.mrb[0].mxu1 %vm492_vm1, %v462_v16 }
 0x1fa   :  { %743 = vmatprep.mubr.f32.mxu0 %v1337_v61  ;;  %923 = vmatprep.mubr.f32.mxu1 %v1337_v61 }
 0x1fd   :  { %1223 = vmatmul.mubr.msk.f32.gmra.mrb[2].mxu0 %vm492_vm1, %v433_v25  ;;  %1253 = vmatmul.mubr.msk.f32.gmra.mrb[2].mxu1 %vm492_vm1, %v463_v19 }
 0x1fe   :  { %749 = vmatprep.mubr.f32.mxu0 %v1337_v61  ;;  %929 = vmatprep.mubr.f32.mxu1 %v1337_v61 }
 0x201   :  { %1224 = vmatmul.mubr.msk.f32.gmra.mrb[4].mxu0 %vm492_vm1, %v434_v24  ;;  %1254 = vmatmul.mubr.msk.f32.gmra.mrb[4].mxu1 %vm492_vm1, %v464_v2 }
 0x202   :  { %755 = vmatprep.mubr.f32.mxu0 %v1337_v61  ;;  %935 = vmatprep.mubr.f32.mxu1 %v1337_v61 }
 0x205   :  { %1225 = vmatmul.mubr.msk.f32.gmra.mrb[6].mxu0 %vm492_vm1, %v435_v4  ;;  %1255 = vmatmul.mubr.msk.f32.gmra.mrb[6].mxu1 %vm492_vm1, %v465_v10 }
 0x206   :  { %761 = vmatprep.mubr.f32.mxu0 %v1337_v61  ;;  %941 = vmatprep.mubr.f32.mxu1 %v1337_v61 }
 0x209   :  { %1226 = vmatmul.mubr.msk.f32.gmra.mrb[8].mxu0 %vm492_vm1, %v436_v11  ;;  %1256 = vmatmul.mubr.msk.f32.gmra.mrb[8].mxu1 %vm492_vm1, %v466_v20 }
 0x20a   :  { %767 = vmatprep.mubr.f32.mxu0 %v1337_v61  ;;  %947 = vmatprep.mubr.f32.mxu1 %v1337_v61 }
 0x20d   :  { %1227 = vmatmul.mubr.msk.f32.gmra.mrb[10].mxu0 %vm492_vm1, %v437_v15  ;;  %1257 = vmatmul.mubr.msk.f32.gmra.mrb[10].mxu1 %vm492_vm1, %v467_v62 }
 0x20e   :  { %773 = vmatprep.mubr.f32.mxu0 %v1337_v61  ;;  %953 = vmatprep.mubr.f32.mxu1 %v1337_v61 }
 0x211   :  { %1228 = vmatmul.mubr.msk.f32.gmra.mrb[12].mxu0 %vm492_vm1, %v438_v63  ;;  %1258 = vmatmul.mubr.msk.f32.gmra.mrb[12].mxu1 %vm492_vm1, %v468_v9 }
 0x212   :  { %779 = vmatprep.mubr.f32.mxu0 %v1337_v61  ;;  %959 = vmatprep.mubr.f32.mxu1 %v1337_v61 }
 0x215   :  { %1229 = vmatmul.mubr.msk.f32.gmra.mrb[14].mxu0 %vm492_vm1, %v439_v27  ;;  %1259 = vmatmul.mubr.msk.f32.gmra.mrb[14].mxu1 %vm492_vm1, %v469_v29 }
 0x216   :  { %785 = vmatprep.mubr.f32.mxu0 %v1337_v61  ;;  %965 = vmatprep.mubr.f32.mxu1 %v1337_v61 }
 0x219   :  { %1230 = vmatmul.mubr.msk.f32.gmra.mrb[16].mxu0 %vm492_vm1, %v440_v32  ;;  %1260 = vmatmul.mubr.msk.f32.gmra.mrb[16].mxu1 %vm492_vm1, %v470_v33 }
 0x21a   :  { %791 = vmatprep.mubr.f32.mxu0 %v1337_v61  ;;  %971 = vmatprep.mubr.f32.mxu1 %v1337_v61 }
 0x21d   :  { %1231 = vmatmul.mubr.msk.f32.gmra.mrb[18].mxu0 %vm492_vm1, %v441_v37  ;;  %1261 = vmatmul.mubr.msk.f32.gmra.mrb[18].mxu1 %vm492_vm1, %v471_v12 }
 0x21e   :  { %797 = vmatprep.mubr.f32.mxu0 %v1337_v61  ;;  %977 = vmatprep.mubr.f32.mxu1 %v1337_v61 }
 0x221   :  { %1232 = vmatmul.mubr.msk.f32.gmra.mrb[20].mxu0 %vm492_vm1, %v442_v39  ;;  %1262 = vmatmul.mubr.msk.f32.gmra.mrb[20].mxu1 %vm492_vm1, %v472_v42 }
 0x222   :  { %803 = vmatprep.mubr.f32.mxu0 %v1337_v61  ;;  %983 = vmatprep.mubr.f32.mxu1 %v1337_v61 }
 0x225   :  { %1233 = vmatmul.mubr.msk.f32.gmra.mrb[22].mxu0 %vm492_vm1, %v443_v44  ;;  %1263 = vmatmul.mubr.msk.f32.gmra.mrb[22].mxu1 %vm492_vm1, %v473_v45 }
 0x226   :  { %809 = vmatprep.mubr.f32.mxu0 %v1337_v61  ;;  %989 = vmatprep.mubr.f32.mxu1 %v1337_v61 }
 0x229   :  { %1234 = vmatmul.mubr.msk.f32.gmra.mrb[24].mxu0 %vm492_vm1, %v444_v46  ;;  %1264 = vmatmul.mubr.msk.f32.gmra.mrb[24].mxu1 %vm492_vm1, %v474_v18 }
 0x22a   :  { %815 = vmatprep.mubr.f32.mxu0 %v1337_v61  ;;  %995 = vmatprep.mubr.f32.mxu1 %v1337_v61 }
 0x22d   :  { %1235 = vmatmul.mubr.msk.f32.gmra.mrb[26].mxu0 %vm492_vm1, %v445_v14  ;;  %1265 = vmatmul.mubr.msk.f32.gmra.mrb[26].mxu1 %vm492_vm1, %v475_v28 }
 0x22e   :  { %821 = vmatprep.mubr.f32.mxu0 %v1337_v61  ;;  %1001 = vmatprep.mubr.f32.mxu1 %v1337_v61 }
 0x231   :  { %1236 = vmatmul.mubr.msk.f32.gmra.mrb[28].mxu0 %vm492_vm1, %v446_v8  ;;  %1266 = vmatmul.mubr.msk.f32.gmra.mrb[28].mxu1 %vm492_vm1, %v476_v41 }
 0x232   :  { %827 = vmatprep.mubr.f32.mxu0 %v1337_v61  ;;  %1007 = vmatprep.mubr.f32.mxu1 %v1337_v61 }
 0x235   :  { %1237 = vmatmul.mubr.msk.f32.gmra.mrb[30].mxu0 %vm492_vm1, %v447_v40  ;;  %1267 = vmatmul.mubr.msk.f32.gmra.mrb[30].mxu1 %vm492_vm1, %v477_v21 }
 0x236   :  { %833 = vmatprep.mubr.f32.mxu0 %v1337_v61  ;;  %1013 = vmatprep.mubr.f32.mxu1 %v1337_v61 }
 0x239   :  { %1238 = vmatmul.mubr.msk.f32.gmra.mrb[32].mxu0 %vm492_vm1, %v448_v23  ;;  %1268 = vmatmul.mubr.msk.f32.gmra.mrb[32].mxu1 %vm492_vm1, %v478_v56 }
 0x23a   :  { %839 = vmatprep.mubr.f32.mxu0 %v1337_v61  ;;  %1019 = vmatprep.mubr.f32.mxu1 %v1337_v61 }
 0x23d   :  { %1239 = vmatmul.mubr.msk.f32.gmra.mrb[34].mxu0 %vm492_vm1, %v449_v48  ;;  %1269 = vmatmul.mubr.msk.f32.gmra.mrb[34].mxu1 %vm492_vm1, %v479_v50 }
 0x23e   :  { %845 = vmatprep.mubr.f32.mxu0 %v1337_v61  ;;  %1025 = vmatprep.mubr.f32.mxu1 %v1337_v61 }
 0x241   :  { %1240 = vmatmul.mubr.msk.f32.gmra.mrb[36].mxu0 %vm492_vm1, %v450_v60  ;;  %1270 = vmatmul.mubr.msk.f32.gmra.mrb[36].mxu1 %vm492_vm1, %v480_v0 }
 0x242   :  { %851 = vmatprep.mubr.f32.mxu0 %v1337_v61  ;;  %1031 = vmatprep.mubr.f32.mxu1 %v1337_v61 }
 0x245   :  { %1241 = vmatmul.mubr.msk.f32.gmra.mrb[38].mxu0 %vm492_vm1, %v451_v1  ;;  %1271 = vmatmul.mubr.msk.f32.gmra.mrb[38].mxu1 %vm492_vm1, %v481_v49 }
 0x246   :  { %857 = vmatprep.mubr.f32.mxu0 %v1337_v61  ;;  %1037 = vmatprep.mubr.f32.mxu1 %v1337_v61 }
 0x249   :  { %1242 = vmatmul.mubr.msk.f32.gmra.mrb[40].mxu0 %vm492_vm1, %v452_v5  ;;  %1272 = vmatmul.mubr.msk.f32.gmra.mrb[40].mxu1 %vm492_vm1, %v482_v6 }
 0x24a   :  { %863 = vmatprep.mubr.f32.mxu0 %v1337_v61  ;;  %1043 = vmatprep.mubr.f32.mxu1 %v1337_v61 }
 0x24d   :  { %1243 = vmatmul.mubr.msk.f32.gmra.mrb[42].mxu0 %vm492_vm1, %v453_v38  ;;  %1273 = vmatmul.mubr.msk.f32.gmra.mrb[42].mxu1 %vm492_vm1, %v483_v26 }
 0x24e   :  { %869 = vmatprep.mubr.f32.mxu0 %v1337_v61  ;;  %1049 = vmatprep.mubr.f32.mxu1 %v1337_v61 }
 0x251   :  { %1244 = vmatmul.mubr.msk.f32.gmra.mrb[44].mxu0 %vm492_vm1, %v454_v22  ;;  %1274 = vmatmul.mubr.msk.f32.gmra.mrb[44].mxu1 %vm492_vm1, %v484_v13 }
 0x252   :  { %875 = vmatprep.mubr.f32.mxu0 %v1337_v61  ;;  %1055 = vmatprep.mubr.f32.mxu1 %v1337_v61 }
 0x255   :  { %1245 = vmatmul.mubr.msk.f32.gmra.mrb[46].mxu0 %vm492_vm1, %v455_v51  ;;  %1275 = vmatmul.mubr.msk.f32.gmra.mrb[46].mxu1 %vm492_vm1, %v485_v52 }
 0x256   :  { %881 = vmatprep.mubr.f32.mxu0 %v1337_v61  ;;  %1061 = vmatprep.mubr.f32.mxu1 %v1337_v61 }
 0x259   :  { %1246 = vmatmul.mubr.msk.f32.gmra.mrb[48].mxu0 %vm492_vm1, %v456_v54  ;;  %1276 = vmatmul.mubr.msk.f32.gmra.mrb[48].mxu1 %vm492_vm1, %v486_v43 }
 0x25a   :  { %887 = vmatprep.mubr.f32.mxu0 %v1337_v61  ;;  %1067 = vmatprep.mubr.f32.mxu1 %v1337_v61 }
 0x25d   :  { %1247 = vmatmul.mubr.msk.f32.gmra.mrb[50].mxu0 %vm492_vm1, %v457_v36  ;;  %1277 = vmatmul.mubr.msk.f32.gmra.mrb[50].mxu1 %vm492_vm1, %v487_v47 }
 0x25e   :  { %893 = vmatprep.mubr.f32.mxu0 %v1337_v61  ;;  %1073 = vmatprep.mubr.f32.mxu1 %v1337_v61 }
 0x261   :  { %1248 = vmatmul.mubr.msk.f32.gmra.mrb[52].mxu0 %vm492_vm1, %v458_v57  ;;  %1278 = vmatmul.mubr.msk.f32.gmra.mrb[52].mxu1 %vm492_vm1, %v488_v53 }
 0x262   :  { %899 = vmatprep.mubr.f32.mxu0 %v1337_v61  ;;  %1079 = vmatprep.mubr.f32.mxu1 %v1337_v61 }
 0x265   :  { %1249 = vmatmul.mubr.msk.f32.gmra.mrb[54].mxu0 %vm492_vm1, %v459_v55  ;;  %1279 = vmatmul.mubr.msk.f32.gmra.mrb[54].mxu1 %vm492_vm1, %v489_v58 }
 0x266   :  { %905 = vmatprep.mubr.f32.mxu0 %v1337_v61  ;;  %1085 = vmatprep.mubr.f32.mxu1 %v1337_v61 }
 0x269   :  { %1250 = vmatmul.mubr.msk.f32.gmra.mrb[56].mxu0 %vm492_vm1, %v460_v3  ;;  %1280 = vmatmul.mubr.msk.f32.gmra.mrb[56].mxu1 %vm492_vm1, %v490_v59 }
 0x26a   :  { %911 = vmatprep.mubr.f32.mxu0 %v1337_v61  ;;  %1091 = vmatprep.mubr.f32.mxu1 %v1337_v61 }
 0x26d   :  { %1251 = vmatmul.mubr.msk.f32.gmra.mrb[58].mxu0 %vm492_vm1, %v461_v35  ;;  %1281 = vmatmul.mubr.msk.f32.gmra.mrb[58].mxu1 %vm492_vm1, %v491_v7 }
 0x2cc   :  { %v739_v17 = vpop.f32.mrb[0].mxu0  ;;  %v919_v31 = vpop.f32.mrb[0].mxu1 }
 0x2cd   :  { %1098 = vst [vmem:[%s2459_s5] sm:$0xff] %v739_v17  ;;  %1158 = vst [vmem:[%s2459_s5 + $0x1e0] sm:$0xff] %v919_v31  ;;  %v741_v61 = vpop.f32.mrb[1].mxu0  ;;  %v921_v34 = vpop.f32.mrb[1].mxu1 }
 0x2ce   :  { %1099 = vst.msk [vmem:[%s2459_s5 + $0x8] sm:$0xff] %vm40_vm0, %v741_v61  ;;  %1159 = vst.msk [vmem:[%s2459_s5 + $0x1e8] sm:$0xff] %vm40_vm0, %v921_v34 }
 0x2d0   :  { %v745_v30 = vpop.f32.mrb[2].mxu0  ;;  %v925_v16 = vpop.f32.mrb[2].mxu1 }
 0x2d1   :  { %1100 = vst [vmem:[%s2459_s5 + $0x10] sm:$0xff] %v745_v30  ;;  %1160 = vst [vmem:[%s2459_s5 + $0x1f0] sm:$0xff] %v925_v16  ;;  %v747_v25 = vpop.f32.mrb[3].mxu0  ;;  %v927_v19 = vpop.f32.mrb[3].mxu1 }
 0x2d2   :  { %1101 = vst.msk [vmem:[%s2459_s5 + $0x18] sm:$0xff] %vm40_vm0, %v747_v25  ;;  %1161 = vst.msk [vmem:[%s2459_s5 + $0x1f8] sm:$0xff] %vm40_vm0, %v927_v19 }
 0x2d4   :  { %v751_v24 = vpop.f32.mrb[4].mxu0  ;;  %v931_v2 = vpop.f32.mrb[4].mxu1 }
 0x2d5   :  { %1102 = vst [vmem:[%s2459_s5 + $0x20] sm:$0xff] %v751_v24  ;;  %1162 = vst [vmem:[%s2459_s5 + $0x200] sm:$0xff] %v931_v2  ;;  %v753_v4 = vpop.f32.mrb[5].mxu0  ;;  %v933_v10 = vpop.f32.mrb[5].mxu1 }
 0x2d6   :  { %1103 = vst.msk [vmem:[%s2459_s5 + $0x28] sm:$0xff] %vm40_vm0, %v753_v4  ;;  %1163 = vst.msk [vmem:[%s2459_s5 + $0x208] sm:$0xff] %vm40_vm0, %v933_v10 }
 0x2d8   :  { %v757_v11 = vpop.f32.mrb[6].mxu0  ;;  %v937_v20 = vpop.f32.mrb[6].mxu1 }
 0x2d9   :  { %1104 = vst [vmem:[%s2459_s5 + $0x30] sm:$0xff] %v757_v11  ;;  %1164 = vst [vmem:[%s2459_s5 + $0x210] sm:$0xff] %v937_v20  ;;  %v759_v15 = vpop.f32.mrb[7].mxu0  ;;  %v939_v62 = vpop.f32.mrb[7].mxu1 }
 0x2da   :  { %1105 = vst.msk [vmem:[%s2459_s5 + $0x38] sm:$0xff] %vm40_vm0, %v759_v15  ;;  %1165 = vst.msk [vmem:[%s2459_s5 + $0x218] sm:$0xff] %vm40_vm0, %v939_v62 }
 0x2dc   :  { %v763_v63 = vpop.f32.mrb[8].mxu0  ;;  %v943_v9 = vpop.f32.mrb[8].mxu1 }
 0x2dd   :  { %1106 = vst [vmem:[%s2459_s5 + $0x40] sm:$0xff] %v763_v63  ;;  %1166 = vst [vmem:[%s2459_s5 + $0x220] sm:$0xff] %v943_v9  ;;  %v765_v27 = vpop.f32.mrb[9].mxu0  ;;  %v945_v29 = vpop.f32.mrb[9].mxu1 }
 0x2de   :  { %1107 = vst.msk [vmem:[%s2459_s5 + $0x48] sm:$0xff] %vm40_vm0, %v765_v27  ;;  %1167 = vst.msk [vmem:[%s2459_s5 + $0x228] sm:$0xff] %vm40_vm0, %v945_v29 }
 0x2e0   :  { %v769_v32 = vpop.f32.mrb[10].mxu0  ;;  %v949_v33 = vpop.f32.mrb[10].mxu1 }
 0x2e1   :  { %1108 = vst [vmem:[%s2459_s5 + $0x50] sm:$0xff] %v769_v32  ;;  %1168 = vst [vmem:[%s2459_s5 + $0x230] sm:$0xff] %v949_v33  ;;  %v771_v37 = vpop.f32.mrb[11].mxu0  ;;  %v951_v12 = vpop.f32.mrb[11].mxu1 }
 0x2e2   :  { %1109 = vst.msk [vmem:[%s2459_s5 + $0x58] sm:$0xff] %vm40_vm0, %v771_v37  ;;  %1169 = vst.msk [vmem:[%s2459_s5 + $0x238] sm:$0xff] %vm40_vm0, %v951_v12 }
 0x2e4   :  { %v775_v39 = vpop.f32.mrb[12].mxu0  ;;  %v955_v42 = vpop.f32.mrb[12].mxu1 }
 0x2e5   :  { %1110 = vst [vmem:[%s2459_s5 + $0x60] sm:$0xff] %v775_v39  ;;  %1170 = vst [vmem:[%s2459_s5 + $0x240] sm:$0xff] %v955_v42  ;;  %v777_v44 = vpop.f32.mrb[13].mxu0  ;;  %v957_v45 = vpop.f32.mrb[13].mxu1 }
 0x2e6   :  { %1111 = vst.msk [vmem:[%s2459_s5 + $0x68] sm:$0xff] %vm40_vm0, %v777_v44  ;;  %1171 = vst.msk [vmem:[%s2459_s5 + $0x248] sm:$0xff] %vm40_vm0, %v957_v45 }
 0x2e8   :  { %v781_v46 = vpop.f32.mrb[14].mxu0  ;;  %v961_v18 = vpop.f32.mrb[14].mxu1 }
 0x2e9   :  { %1112 = vst [vmem:[%s2459_s5 + $0x70] sm:$0xff] %v781_v46  ;;  %1172 = vst [vmem:[%s2459_s5 + $0x250] sm:$0xff] %v961_v18  ;;  %v783_v14 = vpop.f32.mrb[15].mxu0  ;;  %v963_v28 = vpop.f32.mrb[15].mxu1 }
 0x2ea   :  { %1113 = vst.msk [vmem:[%s2459_s5 + $0x78] sm:$0xff] %vm40_vm0, %v783_v14  ;;  %1173 = vst.msk [vmem:[%s2459_s5 + $0x258] sm:$0xff] %vm40_vm0, %v963_v28 }
 0x2ec   :  { %v787_v8 = vpop.f32.mrb[16].mxu0  ;;  %v967_v41 = vpop.f32.mrb[16].mxu1 }
 0x2ed   :  { %1114 = vst [vmem:[%s2459_s5 + $0x80] sm:$0xff] %v787_v8  ;;  %1174 = vst [vmem:[%s2459_s5 + $0x260] sm:$0xff] %v967_v41  ;;  %v789_v40 = vpop.f32.mrb[17].mxu0  ;;  %v969_v21 = vpop.f32.mrb[17].mxu1 }
 0x2ee   :  { %1115 = vst.msk [vmem:[%s2459_s5 + $0x88] sm:$0xff] %vm40_vm0, %v789_v40  ;;  %1175 = vst.msk [vmem:[%s2459_s5 + $0x268] sm:$0xff] %vm40_vm0, %v969_v21 }
 0x2f0   :  { %v793_v23 = vpop.f32.mrb[18].mxu0  ;;  %v973_v56 = vpop.f32.mrb[18].mxu1 }
 0x2f1   :  { %1116 = vst [vmem:[%s2459_s5 + $0x90] sm:$0xff] %v793_v23  ;;  %1176 = vst [vmem:[%s2459_s5 + $0x270] sm:$0xff] %v973_v56  ;;  %v795_v48 = vpop.f32.mrb[19].mxu0  ;;  %v975_v50 = vpop.f32.mrb[19].mxu1 }
 0x2f2   :  { %1117 = vst.msk [vmem:[%s2459_s5 + $0x98] sm:$0xff] %vm40_vm0, %v795_v48  ;;  %1177 = vst.msk [vmem:[%s2459_s5 + $0x278] sm:$0xff] %vm40_vm0, %v975_v50 }
 0x2f4   :  { %v799_v60 = vpop.f32.mrb[20].mxu0  ;;  %v979_v0 = vpop.f32.mrb[20].mxu1 }
 0x2f5   :  { %1118 = vst [vmem:[%s2459_s5 + $0xa0] sm:$0xff] %v799_v60  ;;  %1178 = vst [vmem:[%s2459_s5 + $0x280] sm:$0xff] %v979_v0  ;;  %v801_v1 = vpop.f32.mrb[21].mxu0  ;;  %v981_v49 = vpop.f32.mrb[21].mxu1 }
 0x2f6   :  { %1119 = vst.msk [vmem:[%s2459_s5 + $0xa8] sm:$0xff] %vm40_vm0, %v801_v1  ;;  %1179 = vst.msk [vmem:[%s2459_s5 + $0x288] sm:$0xff] %vm40_vm0, %v981_v49 }
 0x2f8   :  { %v805_v5 = vpop.f32.mrb[22].mxu0  ;;  %v985_v6 = vpop.f32.mrb[22].mxu1 }
 0x2f9   :  { %1120 = vst [vmem:[%s2459_s5 + $0xb0] sm:$0xff] %v805_v5  ;;  %1180 = vst [vmem:[%s2459_s5 + $0x290] sm:$0xff] %v985_v6  ;;  %v807_v38 = vpop.f32.mrb[23].mxu0  ;;  %v987_v26 = vpop.f32.mrb[23].mxu1 }
 0x2fa   :  { %1121 = vst.msk [vmem:[%s2459_s5 + $0xb8] sm:$0xff] %vm40_vm0, %v807_v38  ;;  %1181 = vst.msk [vmem:[%s2459_s5 + $0x298] sm:$0xff] %vm40_vm0, %v987_v26 }
 0x2fc   :  { %v811_v22 = vpop.f32.mrb[24].mxu0  ;;  %v991_v13 = vpop.f32.mrb[24].mxu1 }
 0x2fd   :  { %1122 = vst [vmem:[%s2459_s5 + $0xc0] sm:$0xff] %v811_v22  ;;  %1182 = vst [vmem:[%s2459_s5 + $0x2a0] sm:$0xff] %v991_v13  ;;  %v813_v51 = vpop.f32.mrb[25].mxu0  ;;  %v993_v52 = vpop.f32.mrb[25].mxu1 }
 0x2fe   :  { %1123 = vst.msk [vmem:[%s2459_s5 + $0xc8] sm:$0xff] %vm40_vm0, %v813_v51  ;;  %1183 = vst.msk [vmem:[%s2459_s5 + $0x2a8] sm:$0xff] %vm40_vm0, %v993_v52 }
 0x300   :  { %v817_v54 = vpop.f32.mrb[26].mxu0  ;;  %v997_v43 = vpop.f32.mrb[26].mxu1 }
 0x301   :  { %1124 = vst [vmem:[%s2459_s5 + $0xd0] sm:$0xff] %v817_v54  ;;  %1184 = vst [vmem:[%s2459_s5 + $0x2b0] sm:$0xff] %v997_v43  ;;  %v819_v36 = vpop.f32.mrb[27].mxu0  ;;  %v999_v47 = vpop.f32.mrb[27].mxu1 }
 0x302   :  { %1125 = vst.msk [vmem:[%s2459_s5 + $0xd8] sm:$0xff] %vm40_vm0, %v819_v36  ;;  %1185 = vst.msk [vmem:[%s2459_s5 + $0x2b8] sm:$0xff] %vm40_vm0, %v999_v47 }
 0x304   :  { %v823_v57 = vpop.f32.mrb[28].mxu0  ;;  %v1003_v53 = vpop.f32.mrb[28].mxu1 }
 0x305   :  { %1126 = vst [vmem:[%s2459_s5 + $0xe0] sm:$0xff] %v823_v57  ;;  %1186 = vst [vmem:[%s2459_s5 + $0x2c0] sm:$0xff] %v1003_v53  ;;  %v825_v55 = vpop.f32.mrb[29].mxu0  ;;  %v1005_v58 = vpop.f32.mrb[29].mxu1 }
 0x306   :  { %1127 = vst.msk [vmem:[%s2459_s5 + $0xe8] sm:$0xff] %vm40_vm0, %v825_v55  ;;  %1187 = vst.msk [vmem:[%s2459_s5 + $0x2c8] sm:$0xff] %vm40_vm0, %v1005_v58 }
 0x308   :  { %v829_v3 = vpop.f32.mrb[30].mxu0  ;;  %v1009_v59 = vpop.f32.mrb[30].mxu1 }
 0x309   :  { %1128 = vst [vmem:[%s2459_s5 + $0xf0] sm:$0xff] %v829_v3  ;;  %1188 = vst [vmem:[%s2459_s5 + $0x2d0] sm:$0xff] %v1009_v59  ;;  %v831_v35 = vpop.f32.mrb[31].mxu0  ;;  %v1011_v7 = vpop.f32.mrb[31].mxu1 }
 0x30a   :  { %1129 = vst.msk [vmem:[%s2459_s5 + $0xf8] sm:$0xff] %vm40_vm0, %v831_v35  ;;  %1189 = vst.msk [vmem:[%s2459_s5 + $0x2d8] sm:$0xff] %vm40_vm0, %v1011_v7 }
 0x30c   :  { %v835_v17 = vpop.f32.mrb[32].mxu0  ;;  %v1015_v31 = vpop.f32.mrb[32].mxu1 }
 0x30d   :  { %1130 = vst [vmem:[%s2459_s5 + $0x100] sm:$0xff] %v835_v17  ;;  %1190 = vst [vmem:[%s2459_s5 + $0x2e0] sm:$0xff] %v1015_v31  ;;  %v837_v61 = vpop.f32.mrb[33].mxu0  ;;  %v1017_v34 = vpop.f32.mrb[33].mxu1 }
 0x30e   :  { %1131 = vst.msk [vmem:[%s2459_s5 + $0x108] sm:$0xff] %vm40_vm0, %v837_v61  ;;  %1191 = vst.msk [vmem:[%s2459_s5 + $0x2e8] sm:$0xff] %vm40_vm0, %v1017_v34 }
 0x310   :  { %v841_v30 = vpop.f32.mrb[34].mxu0  ;;  %v1021_v16 = vpop.f32.mrb[34].mxu1 }
 0x311   :  { %1132 = vst [vmem:[%s2459_s5 + $0x110] sm:$0xff] %v841_v30  ;;  %1192 = vst [vmem:[%s2459_s5 + $0x2f0] sm:$0xff] %v1021_v16  ;;  %v843_v25 = vpop.f32.mrb[35].mxu0  ;;  %v1023_v19 = vpop.f32.mrb[35].mxu1 }
 0x312   :  { %1133 = vst.msk [vmem:[%s2459_s5 + $0x118] sm:$0xff] %vm40_vm0, %v843_v25  ;;  %1193 = vst.msk [vmem:[%s2459_s5 + $0x2f8] sm:$0xff] %vm40_vm0, %v1023_v19 }
 0x314   :  { %v847_v24 = vpop.f32.mrb[36].mxu0  ;;  %v1027_v2 = vpop.f32.mrb[36].mxu1 }
 0x315   :  { %1134 = vst [vmem:[%s2459_s5 + $0x120] sm:$0xff] %v847_v24  ;;  %1194 = vst [vmem:[%s2459_s5 + $0x300] sm:$0xff] %v1027_v2  ;;  %v849_v4 = vpop.f32.mrb[37].mxu0  ;;  %v1029_v10 = vpop.f32.mrb[37].mxu1 }
 0x316   :  { %1135 = vst.msk [vmem:[%s2459_s5 + $0x128] sm:$0xff] %vm40_vm0, %v849_v4  ;;  %1195 = vst.msk [vmem:[%s2459_s5 + $0x308] sm:$0xff] %vm40_vm0, %v1029_v10 }
 0x318   :  { %v853_v11 = vpop.f32.mrb[38].mxu0  ;;  %v1033_v20 = vpop.f32.mrb[38].mxu1 }
 0x319   :  { %1136 = vst [vmem:[%s2459_s5 + $0x130] sm:$0xff] %v853_v11  ;;  %1196 = vst [vmem:[%s2459_s5 + $0x310] sm:$0xff] %v1033_v20  ;;  %v855_v15 = vpop.f32.mrb[39].mxu0  ;;  %v1035_v62 = vpop.f32.mrb[39].mxu1 }
 0x31a   :  { %1137 = vst.msk [vmem:[%s2459_s5 + $0x138] sm:$0xff] %vm40_vm0, %v855_v15  ;;  %1197 = vst.msk [vmem:[%s2459_s5 + $0x318] sm:$0xff] %vm40_vm0, %v1035_v62 }
 0x31c   :  { %v859_v63 = vpop.f32.mrb[40].mxu0  ;;  %v1039_v9 = vpop.f32.mrb[40].mxu1 }
 0x31d   :  { %1138 = vst [vmem:[%s2459_s5 + $0x140] sm:$0xff] %v859_v63  ;;  %1198 = vst [vmem:[%s2459_s5 + $0x320] sm:$0xff] %v1039_v9  ;;  %v861_v27 = vpop.f32.mrb[41].mxu0  ;;  %v1041_v29 = vpop.f32.mrb[41].mxu1 }
 0x31e   :  { %1139 = vst.msk [vmem:[%s2459_s5 + $0x148] sm:$0xff] %vm40_vm0, %v861_v27  ;;  %1199 = vst.msk [vmem:[%s2459_s5 + $0x328] sm:$0xff] %vm40_vm0, %v1041_v29 }
 0x320   :  { %v865_v32 = vpop.f32.mrb[42].mxu0  ;;  %v1045_v33 = vpop.f32.mrb[42].mxu1 }
 0x321   :  { %1140 = vst [vmem:[%s2459_s5 + $0x150] sm:$0xff] %v865_v32  ;;  %1200 = vst [vmem:[%s2459_s5 + $0x330] sm:$0xff] %v1045_v33  ;;  %v867_v37 = vpop.f32.mrb[43].mxu0  ;;  %v1047_v12 = vpop.f32.mrb[43].mxu1 }
 0x322   :  { %1141 = vst.msk [vmem:[%s2459_s5 + $0x158] sm:$0xff] %vm40_vm0, %v867_v37  ;;  %1201 = vst.msk [vmem:[%s2459_s5 + $0x338] sm:$0xff] %vm40_vm0, %v1047_v12 }
 0x324   :  { %v871_v39 = vpop.f32.mrb[44].mxu0  ;;  %v1051_v42 = vpop.f32.mrb[44].mxu1 }
 0x325   :  { %1142 = vst [vmem:[%s2459_s5 + $0x160] sm:$0xff] %v871_v39  ;;  %1202 = vst [vmem:[%s2459_s5 + $0x340] sm:$0xff] %v1051_v42  ;;  %v873_v44 = vpop.f32.mrb[45].mxu0  ;;  %v1053_v45 = vpop.f32.mrb[45].mxu1 }
 0x326   :  { %1143 = vst.msk [vmem:[%s2459_s5 + $0x168] sm:$0xff] %vm40_vm0, %v873_v44  ;;  %1203 = vst.msk [vmem:[%s2459_s5 + $0x348] sm:$0xff] %vm40_vm0, %v1053_v45 }
 0x328   :  { %v877_v46 = vpop.f32.mrb[46].mxu0  ;;  %v1057_v18 = vpop.f32.mrb[46].mxu1 }
 0x329   :  { %1144 = vst [vmem:[%s2459_s5 + $0x170] sm:$0xff] %v877_v46  ;;  %1204 = vst [vmem:[%s2459_s5 + $0x350] sm:$0xff] %v1057_v18  ;;  %v879_v14 = vpop.f32.mrb[47].mxu0  ;;  %v1059_v28 = vpop.f32.mrb[47].mxu1 }
 0x32a   :  { %1145 = vst.msk [vmem:[%s2459_s5 + $0x178] sm:$0xff] %vm40_vm0, %v879_v14  ;;  %1205 = vst.msk [vmem:[%s2459_s5 + $0x358] sm:$0xff] %vm40_vm0, %v1059_v28 }
 0x32c   :  { %v883_v8 = vpop.f32.mrb[48].mxu0  ;;  %v1063_v41 = vpop.f32.mrb[48].mxu1 }
 0x32d   :  { %1146 = vst [vmem:[%s2459_s5 + $0x180] sm:$0xff] %v883_v8  ;;  %1206 = vst [vmem:[%s2459_s5 + $0x360] sm:$0xff] %v1063_v41  ;;  %v885_v40 = vpop.f32.mrb[49].mxu0  ;;  %v1065_v21 = vpop.f32.mrb[49].mxu1 }
 0x32e   :  { %1147 = vst.msk [vmem:[%s2459_s5 + $0x188] sm:$0xff] %vm40_vm0, %v885_v40  ;;  %1207 = vst.msk [vmem:[%s2459_s5 + $0x368] sm:$0xff] %vm40_vm0, %v1065_v21 }
 0x330   :  { %v889_v23 = vpop.f32.mrb[50].mxu0  ;;  %v1069_v56 = vpop.f32.mrb[50].mxu1 }
 0x331   :  { %1148 = vst [vmem:[%s2459_s5 + $0x190] sm:$0xff] %v889_v23  ;;  %1208 = vst [vmem:[%s2459_s5 + $0x370] sm:$0xff] %v1069_v56  ;;  %v891_v48 = vpop.f32.mrb[51].mxu0  ;;  %v1071_v50 = vpop.f32.mrb[51].mxu1 }
 0x332   :  { %1149 = vst.msk [vmem:[%s2459_s5 + $0x198] sm:$0xff] %vm40_vm0, %v891_v48  ;;  %1209 = vst.msk [vmem:[%s2459_s5 + $0x378] sm:$0xff] %vm40_vm0, %v1071_v50 }
 0x334   :  { %v895_v60 = vpop.f32.mrb[52].mxu0  ;;  %v1075_v0 = vpop.f32.mrb[52].mxu1 }
 0x335   :  { %1150 = vst [vmem:[%s2459_s5 + $0x1a0] sm:$0xff] %v895_v60  ;;  %1210 = vst [vmem:[%s2459_s5 + $0x380] sm:$0xff] %v1075_v0  ;;  %v897_v1 = vpop.f32.mrb[53].mxu0  ;;  %v1077_v49 = vpop.f32.mrb[53].mxu1 }
 0x336   :  { %1151 = vst.msk [vmem:[%s2459_s5 + $0x1a8] sm:$0xff] %vm40_vm0, %v897_v1  ;;  %1211 = vst.msk [vmem:[%s2459_s5 + $0x388] sm:$0xff] %vm40_vm0, %v1077_v49 }
 0x338   :  { %v901_v5 = vpop.f32.mrb[54].mxu0  ;;  %v1081_v6 = vpop.f32.mrb[54].mxu1 }
 0x339   :  { %1152 = vst [vmem:[%s2459_s5 + $0x1b0] sm:$0xff] %v901_v5  ;;  %1212 = vst [vmem:[%s2459_s5 + $0x390] sm:$0xff] %v1081_v6  ;;  %v903_v38 = vpop.f32.mrb[55].mxu0  ;;  %v1083_v26 = vpop.f32.mrb[55].mxu1 }
 0x33a   :  { %1153 = vst.msk [vmem:[%s2459_s5 + $0x1b8] sm:$0xff] %vm40_vm0, %v903_v38  ;;  %1213 = vst.msk [vmem:[%s2459_s5 + $0x398] sm:$0xff] %vm40_vm0, %v1083_v26 }
 0x33c   :  { %v907_v22 = vpop.f32.mrb[56].mxu0  ;;  %v1087_v13 = vpop.f32.mrb[56].mxu1 }
 0x33d   :  { %1154 = vst [vmem:[%s2459_s5 + $0x1c0] sm:$0xff] %v907_v22  ;;  %1214 = vst [vmem:[%s2459_s5 + $0x3a0] sm:$0xff] %v1087_v13  ;;  %v909_v51 = vpop.f32.mrb[57].mxu0  ;;  %v1089_v52 = vpop.f32.mrb[57].mxu1 }
 0x33e   :  { %1155 = vst.msk [vmem:[%s2459_s5 + $0x1c8] sm:$0xff] %vm40_vm0, %v909_v51  ;;  %1215 = vst.msk [vmem:[%s2459_s5 + $0x3a8] sm:$0xff] %vm40_vm0, %v1089_v52 }
 0x340   :  { %v913_v54 = vpop.f32.mrb[58].mxu0  ;;  %v1093_v43 = vpop.f32.mrb[58].mxu1 }
 0x341   :  { %1156 = vst [vmem:[%s2459_s5 + $0x1d0] sm:$0xff] %v913_v54  ;;  %1216 = vst [vmem:[%s2459_s5 + $0x3b0] sm:$0xff] %v1093_v43  ;;  %v915_v36 = vpop.f32.mrb[59].mxu0  ;;  %v1095_v47 = vpop.f32.mrb[59].mxu1 }
 0x342   :  { %1157 = vst.msk [vmem:[%s2459_s5 + $0x1d8] sm:$0xff] %vm40_vm0, %v915_v36  ;;  %1217 = vst.msk [vmem:[%s2459_s5 + $0x3b8] sm:$0xff] %vm40_vm0, %v1095_v47 }

</bundles_post_ra>
